<compile_context>
chip_gen: v6e
topology: v6e:2x2x1
jax: 0.10.0
libtpu: 0.0.40
codegen_flags: <defaults>
</compile_context>

<pallas_src>
import functools

import jax
import jax.numpy as jnp
from jax import lax
from jax.experimental import pallas as pl
from jax.experimental.pallas import tpu as pltpu


def _round_up(x, m):
    return ((x + m - 1) // m) * m


def _rnn_chunk_kernel(pre_x_ref, h0_ref, wh_ref, out_ref, hfin_ref, h_scratch,
                      *, t_chunk, t_total, hp):
    """One grid step == one chunk of `t_chunk` RNN time steps.

    pre_x_ref: (Tt, Bp, Np) f32  hoisted input projection + bias (streamed slab)
    h0_ref:    (Bp, Hp)     f32  initial hidden (constant index -> DMA'd once)
    wh_ref:    (Hp, Np)     f32  fused hidden-side weights [Whh.T | Who.T], padded
    out_ref:   (Tt, Bp, Op)      per-step outputs (lane-dense; first O cols real)
    hfin_ref:  (Bp, Hp)     f32  final hidden, written once on the last chunk
    h_scratch: (Bp, Hp)     f32  carried hidden state, VMEM-resident across chunks
    """
    c = pl.program_id(0)

    @pl.when(c == 0)
    def _():
        h_scratch[...] = h0_ref[...]

    # Only needed when T is not a multiple of the chunk (static Python bool, so
    # the guard is not emitted at all when it isn't required).
    needs_guard = (t_total % t_chunk) != 0

    def step(t):
        h_prev = h_scratch[...]
        # Single fused MXU pass per step: columns [0, Hp) -> new hidden,
        # columns [Hp, Np) -> output.  Both splits are lane-tile aligned, and
        # the pad rows/cols of wh_ref are zero so the padded hidden lanes stay
        # exactly 0 across the whole recurrence.
        fused = pre_x_ref[t] + jnp.dot(
            h_prev, wh_ref[...], preferred_element_type=jnp.float32)
        h_scratch[...] = jnp.tanh(fused[:, :hp])
        out_ref[t] = fused[:, hp:].astype(out_ref.dtype)

    # Static unroll over the chunk: Tt is a small compile-time constant, so all
    # per-step ref indices are static slices (zero address math on the serial
    # critical path).
    for t in range(t_chunk):
        if needs_guard:
            @pl.when(c * t_chunk + t < t_total)
            def _(t=t):
                step(t)
        else:
            step(t)

    @pl.when(c == pl.num_programs(0) - 1)
    def _():
        hfin_ref[...] = h_scratch[...].astype(hfin_ref.dtype)


def prepare_params(w_i2h, b_i2h, w_i2o, b_i2o, input_size):
    """Split / transpose / pad the PyTorch-layout parameters once.

    cat(x, h) @ W.T  ==  x @ W[:, :I].T + h @ W[:, I:].T, so each Linear is
    split into an input part (hoisted into the wrapper matmul) and a hidden
    part (the only weight the kernel touches), and the two Linears are fused
    along the output axis:
        wx_fused : (I,  Np)   Np = Hp + Op,  Hp/Op = round_up(H/O, 128)
        wh_fused : (Hp, Np)
    INVARIANT the kernel relies on: rows >= H of wh_fused and the pad columns
    [H, Hp) / [Hp + O, Np) are ZERO, so padded hidden lanes stay exactly 0.
    """
    H, fan_in = w_i2h.shape
    O = w_i2o.shape[0]
    I = input_size
    assert fan_in == I + H and w_i2o.shape == (O, fan_in), "unexpected weight layout"

    Hp = _round_up(max(H, 128), 128)
    Op = _round_up(max(O, 128), 128)
    Np = Hp + Op

    f32 = jnp.float32
    wxh = w_i2h[:, :I].T.astype(f32)   # (I, H)
    whh = w_i2h[:, I:].T.astype(f32)   # (H, H)
    wxo = w_i2o[:, :I].T.astype(f32)   # (I, O)
    who = w_i2o[:, I:].T.astype(f32)   # (H, O)

    wx_fused = jnp.concatenate(
        [jnp.pad(wxh, ((0, 0), (0, Hp - H))),
         jnp.pad(wxo, ((0, 0), (0, Op - O)))], axis=1)           # (I, Np)
    wh_fused = jnp.concatenate(
        [jnp.pad(whh, ((0, Hp - H), (0, Hp - H))),
         jnp.pad(who, ((0, Hp - H), (0, Op - O)))], axis=1)      # (Hp, Np)
    b_fused = jnp.concatenate(
        [jnp.pad(b_i2h.astype(f32), (0, Hp - H)),
         jnp.pad(b_i2o.astype(f32), (0, Op - O))])               # (Np,)

    return wx_fused, wh_fused, b_fused, (I, H, O, Hp, Op, Np)


def rnnet_forward_seq(x_seq, hidden0, params, *, time_chunk=16, out_dtype=None):
    """Run the whole recurrence inside one pallas_call.

    x_seq:   (T, B, I)
    hidden0: (B, H)
    returns (outputs (T, B, O), final_hidden (B, H))

    For large batches on v7x, a leading "parallel" batch grid axis would use
    both TensorCores; for bf16 deployments, cast wh_fused / pre_x to bf16 while
    keeping the f32 accumulation and the f32 hidden carry.  Both are no-ops at
    these demo sizes and are left out.
    """
    wx_fused, wh_fused, b_fused, (I, H, O, Hp, Op, Np) = params
    T, B, _ = x_seq.shape
    out_dtype = x_seq.dtype if out_dtype is None else out_dtype

    Bp = _round_up(max(B, 8), 8)                 # fill sublanes
    Tt = max(1, min(time_chunk, T))              # time steps per grid step
    Tp = _round_up(T, Tt)

    # Opt 1: hoist the input projection out of the serial recurrence — one big
    # batched matmul (M = T*B rows) plus the fused bias add, done by XLA at
    # full MXU utilization before the kernel runs.
    pre_x = (jnp.einsum('tbi,in->tbn', x_seq, wx_fused,
                        preferred_element_type=jnp.float32)
             + b_fused).astype(jnp.float32)                       # (T, B, Np)
    pre_x = jnp.pad(pre_x, ((0, Tp - T), (0, Bp - B), (0, 0)))    # (Tp, Bp, Np)

    h0_p = jnp.pad(hidden0.astype(jnp.float32), ((0, Bp - B), (0, Hp - H)))

    # Opt 5: size the scoped VMEM limit for the resident weight + streaming
    # buffers (defaults: 16 MiB v5e / 32 MiB v6e+); clamp to stay chip-safe.
    est = 4 * (2 * (Hp * Np + Bp * Hp)        # resident wh + h0 (double-buffered)
               + 2 * Tt * Bp * Np             # streamed pre_x blocks
               + 2 * Bp * Hp                  # final-hidden output block
               + Bp * Hp)                     # hidden-carry scratch
    est += 2 * Tt * Bp * Op * jnp.dtype(out_dtype).itemsize
    vmem_limit = int(min(max(2 * est, 32 * 1024 * 1024), 100 * 1024 * 1024))

    kernel = functools.partial(_rnn_chunk_kernel, t_chunk=Tt, t_total=T, hp=Hp)

    out_p, hfin_p = pl.pallas_call(
        kernel,
        out_shape=(jax.ShapeDtypeStruct((Tp, Bp, Op), out_dtype),
                   jax.ShapeDtypeStruct((Bp, Hp), jnp.float32)),
        grid_spec=pltpu.PrefetchScalarGridSpec(
            num_scalar_prefetch=0,
            grid=(Tp // Tt,),
            in_specs=[
                pl.BlockSpec((Tt, Bp, Np), lambda c: (c, 0, 0)),   # streamed pre_x
                # Constant-index operands below are DMA'd once.  For large H on
                # v7x (64 MiB VMEM) they can additionally be single-buffered
                # with pipeline_mode=pl.Buffered(1); negligible at these sizes.
                pl.BlockSpec((Bp, Hp), lambda c: (0, 0)),          # h0 resident
                pl.BlockSpec((Hp, Np), lambda c: (0, 0)),          # weight resident
            ],
            out_specs=[
                pl.BlockSpec((Tt, Bp, Op), lambda c: (c, 0, 0)),   # per-step outputs
                pl.BlockSpec((Bp, Hp), lambda c: (0, 0)),          # final hidden
            ],
            scratch_shapes=[pltpu.VMEM((Bp, Hp), jnp.float32)],    # carried hidden
        ),
        compiler_params=pltpu.CompilerParams(
            dimension_semantics=("arbitrary",),   # serial time recurrence
            vmem_limit_bytes=vmem_limit,
        ),
    )(pre_x, h0_p, wh_fused)

    outputs = out_p[:T, :B, :O]
    final_hidden = hfin_p[:B, :H].astype(hidden0.dtype)
    return outputs, final_hidden


def rnnet_forward(x, hidden, w_i2h, b_i2h, w_i2o, b_i2o):
    """Exact single-step equivalent of RNNet.forward (T=1 case of the seq kernel)."""
    params = prepare_params(w_i2h, b_i2h, w_i2o, b_i2o, x.shape[1])
    outs, new_hidden = rnnet_forward_seq(x[None], hidden, params)
    return outs[0], new_hidden


# ------------------------- pure-JAX references -------------------------------

def _reference_step(x, h, w_i2h, b_i2h, w_i2o, b_i2o):
    combined = jnp.concatenate([x, h], axis=1)
    new_h = jnp.tanh(combined @ w_i2h.T + b_i2h)
    out = combined @ w_i2o.T + b_i2o
    return out, new_h


def _reference_seq(x_seq, h0, w_i2h, b_i2h, w_i2o, b_i2o):
    def step(h, x_t):
        out, new_h = _reference_step(x_t, h, w_i2h, b_i2h, w_i2o, b_i2o)
        return new_h, out
    h_final, outs = lax.scan(step, h0, x_seq)
    return outs, h_final


if __name__ == "__main__":
    batch = 2
    input_size = 16
    hidden_size = 32
    output_size = 8
    seq_len = 8

    key = jax.random.PRNGKey(0)
    k_x, k_x2, k_wih, k_bih, k_wio, k_bio = jax.random.split(key, 6)

    fan_in = input_size + hidden_size
    bound = 1.0 / (fan_in ** 0.5)
    w_i2h = jax.random.uniform(k_wih, (hidden_size, fan_in), jnp.float32, -bound, bound)
    b_i2h = jax.random.uniform(k_bih, (hidden_size,), jnp.float32, -bound, bound)
    w_i2o = jax.random.uniform(k_wio, (output_size, fan_in), jnp.float32, -bound, bound)
    b_i2o = jax.random.uniform(k_bio, (output_size,), jnp.float32, -bound, bound)

    x_seq = jax.random.normal(k_x, (seq_len, batch, input_size), jnp.float32)
    hidden0 = jnp.zeros((batch, hidden_size), jnp.float32)     # init_hidden()

    # 1) Single-step check (matches the PyTorch module's forward exactly).
    out1, h1 = rnnet_forward(x_seq[0], hidden0, w_i2h, b_i2h, w_i2o, b_i2o)
    jax.block_until_ready((out1, h1))
    ref_o1, ref_h1 = _reference_step(x_seq[0], hidden0, w_i2h, b_i2h, w_i2o, b_i2o)
    assert jnp.allclose(out1, ref_o1, rtol=1e-4, atol=1e-4), "single-step output mismatch"
    assert jnp.allclose(h1, ref_h1, rtol=1e-4, atol=1e-4), "single-step hidden mismatch"

    # 2) Full-sequence check (single chunk): hoisted x-projection, VMEM-resident
    #    weight, hidden carried in scratch, split lane-dense outputs.
    params = prepare_params(w_i2h, b_i2h, w_i2o, b_i2o, input_size)
    outs, h_final = rnnet_forward_seq(x_seq, hidden0, params)
    jax.block_until_ready((outs, h_final))
    ref_outs, ref_hfinal = _reference_seq(x_seq, hidden0, w_i2h, b_i2h, w_i2o, b_i2o)
    assert jnp.allclose(outs, ref_outs, rtol=1e-4, atol=1e-4), "sequence output mismatch"
    assert jnp.allclose(h_final, ref_hfinal, rtol=1e-4, atol=1e-4), "sequence hidden mismatch"

    # 3) Longer sequence (T=40, chunk=16): exercises the multi-chunk carry and
    #    the ragged-tail guard path.
    x_long = jax.random.normal(k_x2, (40, batch, input_size), jnp.float32)
    outs_l, h_final_l = rnnet_forward_seq(x_long, hidden0, params, time_chunk=16)
    jax.block_until_ready((outs_l, h_final_l))
    ref_outs_l, ref_hfinal_l = _reference_seq(x_long, hidden0, w_i2h, b_i2h, w_i2o, b_i2o)
    assert jnp.allclose(outs_l, ref_outs_l, rtol=1e-4, atol=1e-4), "chunked output mismatch"
    assert jnp.allclose(h_final_l, ref_hfinal_l, rtol=1e-4, atol=1e-4), "chunked hidden mismatch"

    print("KERNEL_OK")
</pallas_src>

<mosaic_0001>
module attributes {stable_mosaic.version = 11 : i64} {
  func.func @_rnn_chunk_kernel(%arg0: i32, %arg1: memref<1x8x256xf32, #tpu.memory_space<vmem>>, %arg2: memref<8x128xf32, #tpu.memory_space<vmem>>, %arg3: memref<128x256xf32, #tpu.memory_space<vmem>>, %arg4: memref<1x8x128xf32, #tpu.memory_space<vmem>>, %arg5: memref<8x128xf32, #tpu.memory_space<vmem>>, %arg6: memref<8x128xf32, #tpu.memory_space<vmem>>) attributes {dimension_semantics = [#tpu.dimension_semantics<arbitrary>], iteration_bounds = array<i64: 1>, scalar_prefetch = 0 : i64, scratch_operands = 1 : i64, tpu.core_type = #tpu.core_type<tc>, window_params = [{transform_indices = @transform_0, window_bounds = array<i64: 1, 8, 256>}, {pipeline_mode = #tpu.pipeline_mode<synchronous>, transform_indices = @transform_1, window_bounds = array<i64: 8, 128>}, {pipeline_mode = #tpu.pipeline_mode<synchronous>, transform_indices = @transform_2, window_bounds = array<i64: 128, 256>}, {transform_indices = @transform_3, window_bounds = array<i64: 1, 8, 128>}, {pipeline_mode = #tpu.pipeline_mode<synchronous>, transform_indices = @transform_4, window_bounds = array<i64: 8, 128>}]} {
    %c0_i32 = arith.constant 0 : i32
    %0 = arith.cmpi eq, %arg0, %c0_i32 : i32
    %1 = arith.extui %0 : i1 to i32
    %c0_i32_0 = arith.constant 0 : i32
    %2 = arith.cmpi ne, %1, %c0_i32_0 : i32
    scf.if %2 {
      %c0_14 = arith.constant 0 : index
      %c0_15 = arith.constant 0 : index
      %19 = vector.load %arg2[%c0_14, %c0_15] : memref<8x128xf32, #tpu.memory_space<vmem>>, vector<8x128xf32>
      %c0_16 = arith.constant 0 : index
      %c0_17 = arith.constant 0 : index
      %20 = vector.load %arg6[%c0_16, %c0_17] : memref<8x128xf32, #tpu.memory_space<vmem>>, vector<8x128xf32>
      tpu.vector_store %arg6[%c0_16, %c0_17], %19 {strides = array<i32>} : memref<8x128xf32, #tpu.memory_space<vmem>>, vector<8x128xf32>,
    } else {
    }
    %c0 = arith.constant 0 : index
    %c0_1 = arith.constant 0 : index
    %3 = vector.load %arg6[%c0, %c0_1] : memref<8x128xf32, #tpu.memory_space<vmem>>, vector<8x128xf32>
    %c0_2 = arith.constant 0 : index
    %c0_3 = arith.constant 0 : index
    %c0_4 = arith.constant 0 : index
    %4 = vector.load %arg1[%c0_2, %c0_3, %c0_4] : memref<1x8x256xf32, #tpu.memory_space<vmem>>, vector<1x8x256xf32>
    %5 = vector.shape_cast %4 : vector<1x8x256xf32> to vector<8x256xf32>
    %c0_5 = arith.constant 0 : index
    %c0_6 = arith.constant 0 : index
    %6 = vector.load %arg3[%c0_5, %c0_6] : memref<128x256xf32, #tpu.memory_space<vmem>>, vector<128x256xf32>
    %cst = arith.constant dense<0.000000e+00> : vector<8x256xf32>
    %7 = tpu.matmul %3, %6, %cst {dimension_numbers = #tpu.dot_dimension_numbers<[1], [0], [0], [1], [0, 0, 1, 1], [], []>} : vector<8x128xf32>, vector<128x256xf32>, vector<8x256xf32> -> vector<8x256xf32>
    %8 = arith.addf %5, %7 : vector<8x256xf32>
    %9 = vector.extract_strided_slice %8 {offsets = [0, 0], sizes = [8, 128], strides = [1, 1]} : vector<8x256xf32> to vector<8x128xf32>
    %10 = math.tanh %9 : vector<8x128xf32>
    %c0_7 = arith.constant 0 : index
    %c0_8 = arith.constant 0 : index
    %11 = vector.load %arg6[%c0_7, %c0_8] : memref<8x128xf32, #tpu.memory_space<vmem>>, vector<8x128xf32>
    tpu.vector_store %arg6[%c0_7, %c0_8], %10 {strides = array<i32>} : memref<8x128xf32, #tpu.memory_space<vmem>>, vector<8x128xf32>,
    %12 = vector.extract_strided_slice %8 {offsets = [0, 128], sizes = [8, 128], strides = [1, 1]} : vector<8x256xf32> to vector<8x128xf32>
    %c0_9 = arith.constant 0 : index
    %c0_10 = arith.constant 0 : index
    %c0_11 = arith.constant 0 : index
    %13 = vector.load %arg4[%c0_9, %c0_10, %c0_11] : memref<1x8x128xf32, #tpu.memory_space<vmem>>, vector<1x8x128xf32>
    %14 = vector.shape_cast %13 : vector<1x8x128xf32> to vector<8x128xf32>
    %15 = vector.shape_cast %12 : vector<8x128xf32> to vector<1x8x128xf32>
    tpu.vector_store %arg4[%c0_9, %c0_10, %c0_11], %15 {strides = array<i32>} : memref<1x8x128xf32, #tpu.memory_space<vmem>>, vector<1x8x128xf32>,
    %c0_i32_12 = arith.constant 0 : i32
    %16 = arith.cmpi eq, %arg0, %c0_i32_12 : i32
    %17 = arith.extui %16 : i1 to i32
    %c0_i32_13 = arith.constant 0 : i32
    %18 = arith.cmpi ne, %17, %c0_i32_13 : i32
    scf.if %18 {
      %c0_14 = arith.constant 0 : index
      %c0_15 = arith.constant 0 : index
      %19 = vector.load %arg6[%c0_14, %c0_15] : memref<8x128xf32, #tpu.memory_space<vmem>>, vector<8x128xf32>
      %c0_16 = arith.constant 0 : index
      %c0_17 = arith.constant 0 : index
      %20 = vector.load %arg5[%c0_16, %c0_17] : memref<8x128xf32, #tpu.memory_space<vmem>>, vector<8x128xf32>
      tpu.vector_store %arg5[%c0_16, %c0_17], %19 {strides = array<i32>} : memref<8x128xf32, #tpu.memory_space<vmem>>, vector<8x128xf32>,
    } else {
    }
    return
  }
  func.func @transform_0(%arg0: i32) -> (i32, i32, i32) {
    %c0_i32 = arith.constant 0 : i32
    %c0_i32_0 = arith.constant 0 : i32
    %c0_i32_1 = arith.constant 0 : i32
    return %arg0, %c0_i32, %c0_i32_0 : i32, i32, i32
  }
  func.func @transform_1(%arg0: i32) -> (i32, i32) {
    %c0_i32 = arith.constant 0 : i32
    %c0_i32_0 = arith.constant 0 : i32
    %c0_i32_1 = arith.constant 0 : i32
    return %c0_i32, %c0_i32_0 : i32, i32
  }
  func.func @transform_2(%arg0: i32) -> (i32, i32) {
    %c0_i32 = arith.constant 0 : i32
    %c0_i32_0 = arith.constant 0 : i32
    %c0_i32_1 = arith.constant 0 : i32
    return %c0_i32, %c0_i32_0 : i32, i32
  }
  func.func @transform_3(%arg0: i32) -> (i32, i32, i32) {
    %c0_i32 = arith.constant 0 : i32
    %c0_i32_0 = arith.constant 0 : i32
    %c0_i32_1 = arith.constant 0 : i32
    return %arg0, %c0_i32, %c0_i32_0 : i32, i32, i32
  }
  func.func @transform_4(%arg0: i32) -> (i32, i32) {
    %c0_i32 = arith.constant 0 : i32
    %c0_i32_0 = arith.constant 0 : i32
    %c0_i32_1 = arith.constant 0 : i32
    return %c0_i32, %c0_i32_0 : i32, i32
  }
}

</mosaic_0001>

<bundles_post_ra>
// kernel: tpu_custom_call.1
= control target key start
LH: loop header
LB: loop body
LE: loop exit
PB: predicated region body
PF: predicated region fallthrough
CT: control target
= control target key end

     0   :  { %10 = vsyncpa [#allocation4], 0  ;;  %s373_s0 = inlined_call_operand.hbm [shape: f32[1,8,256], index: 0, kind: input, shape index: {}]   ;;  %s374_s1 = inlined_call_operand.hbm [shape: f32[8,128], index: 1, kind: input, shape index: {}]   ;;  %s375_s2 = inlined_call_operand.hbm [shape: f32[128,256], index: 2, kind: input, shape index: {}]   ;;  %s376_s3 = inlined_call_operand.hbm [shape: f32[1,8,128], index: 3, kind: output, shape index: {0}]   ;;  %s377_s4 = inlined_call_operand.hbm [shape: f32[8,128], index: 4, kind: output, shape index: {1}]  }
   0x1   :  { %11 = vsyncpa [#allocation7], 0 }
   0x2   :  { %12 = vsyncpa [#allocation5], 0 }
   0x3   :  { %13 = vsyncpa [#allocation11], 0  ;;  %s325_s15 = smov [#allocation6]   ;;  %s326_s17 = smov [#allocation3]  }
   0x4   :  { %s30_s16 = sshll.u32 %s325_s15, 4  ;;  %s20_s18 = sshll.u32 %s326_s17, 4  ;;  %s31_s16 = int_to_ptr.vmem [resolvable:$true] %s30_s16  ;;  %s21_s18 = int_to_ptr.vmem [resolvable:$true] %s20_s18 }
   0x5   :  { %s225_s19 = scalar_lea.vmem %s31_s16, 128  ;;  %p230_p1 = scmp.lt.s32.totalorder %s31_s16, %s31_s16 }
   0x6   :  { %p226_p0 = scmp.ne.s32.totalorder %s31_s16, %s225_s19  ;;  %p231_p2 = scmp.lt.s32.totalorder %s225_s19, %s225_s19 }
   0x8   :  { %p232_p3 = por %p231_p2, %p230_p1 }
   0xa   :  { %p233_p4 = pnand %p232_p3, %p226_p0 }
   0xc   :  { %236 = shalt.err (!%p233_p4)
}
   0xd   :  { %33 = dma.hbm_to_vmem [thread:$0]  %s374_s1, 128, %s31_s16, [#allocation7]  }
   0xe   :  { %s245_s22 = scalar_lea.vmem %s21_s18, 256  ;;  %p250_p6 = scmp.lt.s32.totalorder %s21_s18, %s21_s18 }
   0xf   :  { %p246_p5 = scmp.ne.s32.totalorder %s21_s18, %s245_s22  ;;  %p251_p7 = scmp.lt.s32.totalorder %s245_s22, %s245_s22 }
  0x11   :  { %p252_p8 = por %p251_p7, %p250_p6 }
  0x13   :  { %p253_p9 = pnand %p252_p8, %p246_p5 }
  0x15   :  { %256 = shalt.err (!%p253_p9)
}
  0x16   :  { %23 = dma.hbm_to_vmem [thread:$0]  %s373_s0, 256, %s21_s18, [#allocation4]  }
  0x17   :  { %s327_s25 = smov [#allocation8]  }
  0x18   :  { %s39_s26 = sshll.u32 %s327_s25, 4  ;;  %s40_s26 = int_to_ptr.vmem [resolvable:$true] %s39_s26 }
  0x19   :  { %s265_s27 = scalar_lea.vmem %s40_s26, 4096  ;;  %p270_p11 = scmp.lt.s32.totalorder %s40_s26, %s40_s26 }
  0x1a   :  { %p266_p10 = scmp.ne.s32.totalorder %s40_s26, %s265_s27  ;;  %p271_p12 = scmp.lt.s32.totalorder %s265_s27, %s265_s27 }
  0x1c   :  { %p272_p13 = por %p271_p12, %p270_p11 }
  0x1e   :  { %p273_p0 = pnand %p272_p13, %p266_p10 }
  0x20   :  { %276 = shalt.err (!%p273_p0)
}
  0x21   :  { %s328_s1 = smov 256   ;;  %s329_s28 = smov 16  }
  0x22   :  { %45 = dma.hbm_to_vmem [thread:$0]  %s375_s2, 4096, %s40_s26, [#allocation7], %s328_s1, %s328_s1, %s329_s28  }
  0x23   :  { %317 = dma.done.wait [#allocation4], 256  }
  0x24   :  { %318 = vsyncadd [#allocation4], 4294967040 }
  0x25   :  { %319 = dma.done.wait [#allocation7], 4224  }
  0x26   :  { %320 = vsyncadd [#allocation7], 4294963072  ;;  %v330_v0 = vmov 0.0   ;;  %v95_v1 = vld [vmem:[#allocation8 + $0xf8] sm:$0xff]  ;;  %v94_v2 = vld [vmem:[#allocation8 + $0xf0] sm:$0xff]  ;;  %s331_s0 = smov [#allocation9]  }
  0x27   :  { %160 = vmatprep.mubr.f32.mxu0 %v330_v0  ;;  %v93_v3 = vld [vmem:[#allocation8 + $0xe8] sm:$0xff]  ;;  %96 = vmatprep.subr.mxu0 %v95_v1  ;;  %v92_v4 = vld [vmem:[#allocation8 + $0xe0] sm:$0xff]  ;;  %v91_v5 = vld [vmem:[#allocation8 + $0xd8] sm:$0xff]  ;;  %s183_s2 = sshll.u32 %s331_s0, 4  ;;  %s184_s2 = int_to_ptr.vmem [resolvable:$true] %s183_s2 }
  0x28   :  { %97 = vmatpush1.msra.mxu0 %v94_v2  ;;  %v90_v6 = vld [vmem:[#allocation8 + $0xd0] sm:$0xff]  ;;  %v89_v7 = vld [vmem:[#allocation8 + $0xc8] sm:$0xff]  ;;  %v88_v8 = vld [vmem:[#allocation8 + $0xc0] sm:$0xff]  ;;  %s277_s5 = scalar_lea.vmem %s184_s2, 128  ;;  %p282_p2 = scmp.lt.s32.totalorder %s184_s2, %s184_s2 }
  0x29   :  { %98 = vmatprep.subr.mxu0 %v93_v3  ;;  %v87_v9 = vld [vmem:[#allocation8 + $0xb8] sm:$0xff]  ;;  %v86_v10 = vld [vmem:[#allocation8 + $0xb0] sm:$0xff]  ;;  %v85_v11 = vld [vmem:[#allocation8 + $0xa8] sm:$0xff]  ;;  %p278_p1 = scmp.ne.s32.totalorder %s184_s2, %s277_s5  ;;  %p283_p3 = scmp.lt.s32.totalorder %s277_s5, %s277_s5 }
  0x2a   :  { %99 = vmatpush1.msra.mxu0 %v92_v4  ;;  %v84_v12 = vld [vmem:[#allocation8 + $0xa0] sm:$0xff]  ;;  %v83_v13 = vld [vmem:[#allocation8 + $0x98] sm:$0xff]  ;;  %v82_v14 = vld [vmem:[#allocation8 + $0x90] sm:$0xff] }
  0x2b   :  { %100 = vmatprep.subr.mxu0 %v91_v5  ;;  %v81_v15 = vld [vmem:[#allocation8 + $0x88] sm:$0xff]  ;;  %v80_v16 = vld [vmem:[#allocation8 + $0x80] sm:$0xff]  ;;  %v79_v17 = vld [vmem:[#allocation8 + $0x78] sm:$0xff]  ;;  %p284_p4 = por %p283_p3, %p282_p2 }
  0x2c   :  { %101 = vmatpush1.msra.mxu0 %v90_v6  ;;  %v78_v18 = vld [vmem:[#allocation8 + $0x70] sm:$0xff]  ;;  %v77_v19 = vld [vmem:[#allocation8 + $0x68] sm:$0xff]  ;;  %v76_v20 = vld [vmem:[#allocation8 + $0x60] sm:$0xff] }
  0x2d   :  { %102 = vmatprep.subr.mxu0 %v89_v7  ;;  %v75_v21 = vld [vmem:[#allocation8 + $0x58] sm:$0xff]  ;;  %v74_v22 = vld [vmem:[#allocation8 + $0x50] sm:$0xff]  ;;  %v73_v23 = vld [vmem:[#allocation8 + $0x48] sm:$0xff]  ;;  %p285_p5 = pnand %p284_p4, %p278_p1 }
  0x2e   :  { %103 = vmatpush1.msra.mxu0 %v88_v8  ;;  %v72_v24 = vld [vmem:[#allocation8 + $0x40] sm:$0xff]  ;;  %v71_v25 = vld [vmem:[#allocation8 + $0x38] sm:$0xff]  ;;  %v70_v26 = vld [vmem:[#allocation8 + $0x30] sm:$0xff] }
  0x2f   :  { %104 = vmatprep.subr.mxu0 %v87_v9  ;;  %v69_v27 = vld [vmem:[#allocation8 + $0x28] sm:$0xff]  ;;  %v68_v28 = vld [vmem:[#allocation8 + $0x20] sm:$0xff]  ;;  %v67_v29 = vld [vmem:[#allocation8 + $0x18] sm:$0xff] }
  0x30   :  { %105 = vmatpush1.msra.mxu0 %v86_v10  ;;  %v66_v30 = vld [vmem:[#allocation8 + $0x10] sm:$0xff]  ;;  %v65_v31 = vld [vmem:[#allocation8 + $0x8] sm:$0xff]  ;;  %v64_v32 = vld [vmem:[#allocation8] sm:$0xff] }
  0x31   :  { %106 = vmatprep.subr.mxu0 %v85_v11  ;;  %v59_v33 = vld [vmem:[#allocation6] sm:$0xff]  ;;  %v62_v34 = vld [vmem:[#allocation3] sm:$0xff]  ;;  %v63_v36 = vld [vmem:[#allocation3 + $0x8] sm:$0xff] }
  0x32   :  { %107 = vmatpush1.msra.mxu0 %v84_v12 }
  0x33   :  { %108 = vmatprep.subr.mxu0 %v83_v13 }
  0x34   :  { %109 = vmatpush1.msra.mxu0 %v82_v14 }
  0x35   :  { %110 = vmatprep.subr.mxu0 %v81_v15 }
  0x36   :  { %111 = vmatpush1.msra.mxu0 %v80_v16 }
  0x37   :  { %112 = vmatprep.subr.mxu0 %v79_v17 }
  0x38   :  { %113 = vmatpush1.msra.mxu0 %v78_v18 }
  0x39   :  { %114 = vmatprep.subr.mxu0 %v77_v19 }
  0x3a   :  { %115 = vmatpush1.msra.mxu0 %v76_v20 }
  0x3b   :  { %116 = vmatprep.subr.mxu0 %v75_v21 }
  0x3c   :  { %117 = vmatpush1.msra.mxu0 %v74_v22 }
  0x3d   :  { %118 = vmatprep.subr.mxu0 %v73_v23 }
  0x3e   :  { %119 = vmatpush1.msra.mxu0 %v72_v24 }
  0x3f   :  { %120 = vmatprep.subr.mxu0 %v71_v25 }
  0x40   :  { %121 = vmatpush1.msra.mxu0 %v70_v26 }
  0x41   :  { %122 = vmatprep.subr.mxu0 %v69_v27 }
  0x42   :  { %123 = vmatpush1.msra.mxu0 %v68_v28 }
  0x43   :  { %124 = vmatprep.subr.mxu0 %v67_v29 }
  0x44   :  { %125 = vmatpush1.msra.mxu0 %v66_v30 }
  0x45   :  { %126 = vmatprep.subr.mxu0 %v65_v31 }
  0x46   :  { %127 = vmatpush1.msra.mxu0 %v64_v32 }
  0x47   :  { %161 = vmatmul.mubr.f32.vlgmr.msra.gmra.mxu0 %v59_v33 }
 0x107   :  { %v162_v35 = vpop.f32.mrf.mxu0 }
 0x108   :  { %v167_v37 = vadd.f32 %v162_v35, %v62_v34 }
 0x109   :  { %v164_v38 = vpop.f32.mrf.mxu0 }
 0x10a   :  { %215 = vtanh.f32 %v167_v37  ;;  %v168_v39 = vadd.f32 %v164_v38, %v63_v36 }
 0x10c   :  { %171 = vst [vmem:[#allocation9] sm:$0xff] %v168_v39 }
 0x10d   :  { %288 = shalt.err (!%p285_p5)
}
 0x10e   :  { %186 = dma.vmem_to_hbm [thread:$0]  %s184_s2, 128, %s376_s3, [#allocation5]  }
 0x10f   :  { %s332_s8 = smov [#allocation10]  }
 0x110   :  { %s193_s9 = sshll.u32 %s332_s8, 4  ;;  %s194_s9 = int_to_ptr.vmem [resolvable:$true] %s193_s9 }
 0x111   :  { %s297_s10 = scalar_lea.vmem %s194_s9, 128  ;;  %p302_p7 = scmp.lt.s32.totalorder %s194_s9, %s194_s9 }
 0x112   :  { %p298_p6 = scmp.ne.s32.totalorder %s194_s9, %s297_s10  ;;  %p303_p8 = scmp.lt.s32.totalorder %s297_s10, %s297_s10 }
 0x114   :  { %p304_p9 = por %p303_p8, %p302_p7 }
 0x116   :  { %p305_p10 = pnand %p304_p9, %p298_p6 }
 0x117   :  { %v216_v40 = vpop.eup %215 }
 0x118   :  { %176 = vst [vmem:[#allocation10] sm:$0xff] %v216_v40 }
 0x119   :  { %308 = shalt.err (!%p305_p10)
}
 0x11a   :  { %196 = dma.vmem_to_hbm [thread:$0]  %s194_s9, 128, %s377_s4, [#allocation11]  }
 0x11b   :  { %321 = dma.done.wait [#allocation5], 128  }
 0x11c   :  { %322 = vsyncadd [#allocation5], 4294967168 }
 0x11d   :  { %323 = dma.done.wait [#allocation11], 128  }
 0x11e   :  { %324 = vsyncadd [#allocation11], 4294967168 }
 0x11f   :  { %203 = vsyncpa [#allocation4], 1 }
 0x120   :  { %204 = vsyncpa [#allocation7], 1 }
 0x121   :  { %205 = vsyncpa [#allocation5], 1 }
 0x122   :  { %206 = vsyncpa [#allocation11], 1 }

</bundles_post_ra>
